<compile_context>
chip_gen: v5e
topology: v5e:2x2
jax: 0.10.0
libtpu: 0.0.40
codegen_flags: <defaults>
</compile_context>

<pallas_src>
import functools

import jax
import jax.numpy as jnp
from jax.experimental import pallas as pl
from jax.experimental.pallas import tpu as pltpu


def _ls_ce_kernel(x_ref, t_ref, loss_ref, *, on_value, off_value,
                  ragged, n_true, tile_n):
    # x_ref: (TILE_N, C) logits (native dtype), t_ref: (TILE_N, 1) int32,
    # loss_ref: (TILE_N, 1) f32 per-sample losses for this row tile.
    x = x_ref[...]                                   # native dtype
    t = t_ref[...]                                   # (TILE_N, 1) int32
    tn, c = x.shape

    # Row max in the native dtype (max introduces no rounding, so this is
    # exact for bf16); upcast the scalar-per-row result once.
    m = jnp.max(x, axis=-1, keepdims=True).astype(jnp.float32)

    # log-sum-exp chain: upcast just-in-time inside the exp+reduce chain
    # (exp goes to the EUP; accumulation stays in f32).
    lse = jnp.log(jnp.sum(jnp.exp(x.astype(jnp.float32) - m),
                          axis=-1, keepdims=True))               # (TILE_N, 1)

    # Single fused weighted reduction.  w_c = on at the target class and off
    # elsewhere; sum_c w_c == 1 exactly, so
    #   loss_i = m_i + lse_i - sum_c w_c * x_ic
    # Out-of-range targets simply select off_value everywhere (documented
    # deviation from PyTorch, which would error).
    class_ids = jax.lax.broadcasted_iota(jnp.int32, (tn, c), 1)
    w = jnp.where(class_ids == t, jnp.float32(on_value), jnp.float32(off_value))
    weighted = jnp.sum(w * x.astype(jnp.float32), axis=-1, keepdims=True)

    per_sample = m + lse - weighted                               # (TILE_N, 1)

    if ragged:
        # Only emitted when N % TILE_N != 0.  Padded rows of the last tile
        # contain undefined data (possibly inf/NaN after exp); all reductions
        # above are row-wise so valid rows are unaffected, and this select
        # zeroes the padded rows for good measure (their writeback is clipped
        # by Pallas anyway).
        row = (pl.program_id(0) * tile_n
               + jax.lax.broadcasted_iota(jnp.int32, (tn, 1), 0))
        per_sample = jnp.where(row < n_true, per_sample, 0.0)

    loss_ref[...] = per_sample


def label_smoothing_cross_entropy(logits, target, *, num_classes,
                                  smooth_factor=0.0, tile_n=None,
                                  vmem_budget_bytes=24 << 20):
    """logits: (N, C) float32/bfloat16, target: (N,) int. Returns scalar f32 loss."""
    on_value = 1.0 - smooth_factor
    # max(..., 1) guards the num_classes == 1 edge case (off weight unused then).
    off_value = 1.0 * smooth_factor / max(num_classes - 1, 1)

    n, c = logits.shape
    in_bytes = jnp.dtype(logits.dtype).itemsize
    # Sublane packing multiple for the input dtype: 8 (f32), 16 (bf16), 32 (int8/fp8).
    sub = max(8, 32 // in_bytes)

    if tile_n is None:
        # Per-row VMEM footprint: 2x double-buffered input block plus ~2
        # f32-wide intermediates the compiler may keep live in the reduction
        # chains.  Budget default (24 MiB) leaves headroom on v7x (64 MiB
        # physical VMEM) and is conservative on v5e/v6e (128 MiB).
        per_row_bytes = c * (2 * in_bytes + 2 * 4)
        tile_n = max(sub, min(n, vmem_budget_bytes // per_row_bytes))
    # Round to the dtype's sublane packing multiple (treat user tile_n as a hint).
    tile_n = max(sub, (int(tile_n) // sub) * sub)
    if tile_n >= n:
        # Prefer >= 2 row tiles so ("parallel",) can shard across v7x's two
        # TensorCores; fall back to a single full-extent block for tiny N.
        half = ((pl.cdiv(n, 2) + sub - 1) // sub) * sub
        tile_n = half if half < n else n
    num_tiles = pl.cdiv(n, tile_n)
    ragged = (n % tile_n) != 0
    # TODO(synk): for very large C (e.g. vocab >= 64k) add a second grid axis
    # over classes with an online logsumexp so per-buffer VMEM stays bounded.

    t2d = target.astype(jnp.int32).reshape(n, 1)

    kernel = functools.partial(_ls_ce_kernel, on_value=on_value,
                               off_value=off_value, ragged=ragged,
                               n_true=n, tile_n=tile_n)

    cost = pl.CostEstimate(
        flops=5 * n * c,                      # sub/cmp/select/mul/reduce passes
        transcendentals=n * c + n,            # exp over logits + log per row
        bytes_accessed=n * c * in_bytes + n * 4 + n * 4,
    )

    per_sample = pl.pallas_call(
        kernel,
        out_shape=jax.ShapeDtypeStruct((n, 1), jnp.float32),
        grid_spec=pltpu.PrefetchScalarGridSpec(
            num_scalar_prefetch=0,
            grid=(num_tiles,),
            in_specs=[
                pl.BlockSpec((tile_n, c), lambda i: (i, 0)),   # logits row tile
                pl.BlockSpec((tile_n, 1), lambda i: (i, 0)),   # targets row tile
            ],
            out_specs=pl.BlockSpec((tile_n, 1), lambda i: (i, 0)),
        ),
        compiler_params=pltpu.CompilerParams(
            dimension_semantics=("parallel",),    # row tiles are independent
            vmem_limit_bytes=48 << 20,            # headroom under v7x 64 MiB
        ),
        cost_estimate=cost,
    )(logits, t2d)

    # Final tiny mean in the wrapper.
    return (jnp.sum(per_sample) / jnp.float32(n)).astype(jnp.float32)


def _reference(logits, target, num_classes, smooth_factor):
    on_v = 1.0 - smooth_factor
    off_v = smooth_factor / max(num_classes - 1, 1)
    one_hot = jnp.where(jax.nn.one_hot(target, num_classes) > 0, on_v, off_v)
    logp = jax.nn.log_softmax(logits.astype(jnp.float32), axis=-1)
    return jnp.mean(-jnp.sum(one_hot * logp, axis=-1)).astype(jnp.float32)


if __name__ == "__main__":
    key = jax.random.PRNGKey(0)

    # Test 1: small, single-tile path (batch=8, classes=16), f32 logits.
    batch, num_classes = 8, 16
    smooth_factor = 0.1
    k_logits, k_target, key = jax.random.split(key, 3)
    logits = jax.random.normal(k_logits, (batch, num_classes), dtype=jnp.float32)
    target = jax.random.randint(k_target, (batch,), 0, num_classes, dtype=jnp.int32)

    loss = label_smoothing_cross_entropy(
        logits, target, num_classes=num_classes, smooth_factor=smooth_factor)
    loss = jax.block_until_ready(loss)
    ref = _reference(logits, target, num_classes, smooth_factor)
    assert jnp.allclose(loss, ref, rtol=1e-5, atol=1e-5), (loss, ref)

    # Test 2: multi-tile + ragged last tile (batch=20, tile_n=8 -> 3 tiles,
    # last tile has 4 padded rows), exercises the ragged-mask path.
    batch2, num_classes2 = 20, 128
    k_logits2, k_target2, key = jax.random.split(key, 3)
    logits2 = jax.random.normal(k_logits2, (batch2, num_classes2), dtype=jnp.float32)
    target2 = jax.random.randint(k_target2, (batch2,), 0, num_classes2, dtype=jnp.int32)

    loss2 = label_smoothing_cross_entropy(
        logits2, target2, num_classes=num_classes2, smooth_factor=smooth_factor,
        tile_n=8)
    loss2 = jax.block_until_ready(loss2)
    ref2 = _reference(logits2, target2, num_classes2, smooth_factor)
    assert jnp.allclose(loss2, ref2, rtol=1e-5, atol=1e-5), (loss2, ref2)

    # Test 3: bfloat16 logits (tile_n hint rounds up to the bf16 sublane
    # multiple of 16 -> 2 tiles, ragged last tile), f32 math in-kernel.
    loss3 = label_smoothing_cross_entropy(
        logits2.astype(jnp.bfloat16), target2, num_classes=num_classes2,
        smooth_factor=smooth_factor, tile_n=8)
    loss3 = jax.block_until_ready(loss3)
    ref3 = _reference(logits2.astype(jnp.bfloat16), target2, num_classes2,
                      smooth_factor)
    assert jnp.allclose(loss3, ref3, rtol=2e-2, atol=2e-2), (loss3, ref3)

    print("KERNEL_OK")
</pallas_src>

<mosaic_0001>
module attributes {stable_mosaic.version = 11 : i64} {
  func.func @_ls_ce_kernel(%arg0: i32, %arg1: memref<8x16xf32, #tpu.memory_space<vmem>>, %arg2: memref<8x1xi32, #tpu.memory_space<vmem>>, %arg3: memref<8x1xf32, #tpu.memory_space<vmem>>) attributes {dimension_semantics = [#tpu.dimension_semantics<parallel>], iteration_bounds = array<i64: 1>, scalar_prefetch = 0 : i64, scratch_operands = 0 : i64, tpu.core_type = #tpu.core_type<tc>, window_params = [{transform_indices = @transform_0, window_bounds = array<i64: 8, 16>}, {transform_indices = @transform_1, window_bounds = array<i64: 8, 1>}, {transform_indices = @transform_2, window_bounds = array<i64: 8, 1>}]} {
    %c0 = arith.constant 0 : index
    %c0_0 = arith.constant 0 : index
    %0 = vector.load %arg1[%c0, %c0_0] : memref<8x16xf32, #tpu.memory_space<vmem>>, vector<8x16xf32>
    %c0_1 = arith.constant 0 : index
    %c0_2 = arith.constant 0 : index
    %1 = vector.load %arg2[%c0_1, %c0_2] : memref<8x1xi32, #tpu.memory_space<vmem>>, vector<8x1xi32>
    %cst = arith.constant dense<0xFF800000> : vector<8xf32>
    %2 = vector.multi_reduction <maximumf>, %0, %cst [1] : vector<8x16xf32> to vector<8xf32>
    %3 = vector.shape_cast %2 : vector<8xf32> to vector<8x1xf32>
    %4 = vector.broadcast %3 : vector<8x1xf32> to vector<8x16xf32>
    %5 = arith.subf %0, %4 : vector<8x16xf32>
    %6 = math.exp %5 : vector<8x16xf32>
    %cst_3 = arith.constant dense<0.000000e+00> : vector<8xf32>
    %7 = vector.multi_reduction <add>, %6, %cst_3 [1] : vector<8x16xf32> to vector<8xf32>
    %8 = vector.shape_cast %7 : vector<8xf32> to vector<8x1xf32>
    %9 = math.log %8 : vector<8x1xf32>
    %10 = tpu.iota {dimensions = array<i32: 1>} : vector<8x16xi32>
    %11 = vector.broadcast %1 : vector<8x1xi32> to vector<8x16xi32>
    %12 = arith.cmpi eq, %10, %11 : vector<8x16xi32>
    %cst_4 = arith.constant 0.899999976 : f32
    %cst_5 = arith.constant 0.00666666683 : f32
    %13 = vector.broadcast %cst_4 : f32 to vector<8x16xf32>
    %14 = vector.broadcast %cst_5 : f32 to vector<8x16xf32>
    %15 = arith.select %12, %13, %14 : vector<8x16xi1>, vector<8x16xf32>
    %16 = arith.mulf %15, %0 : vector<8x16xf32>
    %cst_6 = arith.constant dense<0.000000e+00> : vector<8xf32>
    %17 = vector.multi_reduction <add>, %16, %cst_6 [1] : vector<8x16xf32> to vector<8xf32>
    %18 = vector.shape_cast %17 : vector<8xf32> to vector<8x1xf32>
    %19 = arith.addf %3, %9 : vector<8x1xf32>
    %20 = arith.subf %19, %18 : vector<8x1xf32>
    %c0_7 = arith.constant 0 : index
    %c0_8 = arith.constant 0 : index
    %21 = vector.load %arg3[%c0_7, %c0_8] : memref<8x1xf32, #tpu.memory_space<vmem>>, vector<8x1xf32>
    tpu.vector_store %arg3[%c0_7, %c0_8], %20 {strides = array<i32>} : memref<8x1xf32, #tpu.memory_space<vmem>>, vector<8x1xf32>,
    return
  }
  func.func @transform_0(%arg0: i32) -> (i32, i32) {
    %c0_i32 = arith.constant 0 : i32
    %c0_i32_0 = arith.constant 0 : i32
    return %arg0, %c0_i32 : i32, i32
  }
  func.func @transform_1(%arg0: i32) -> (i32, i32) {
    %c0_i32 = arith.constant 0 : i32
    %c0_i32_0 = arith.constant 0 : i32
    return %arg0, %c0_i32 : i32, i32
  }
  func.func @transform_2(%arg0: i32) -> (i32, i32) {
    %c0_i32 = arith.constant 0 : i32
    %c0_i32_0 = arith.constant 0 : i32
    return %arg0, %c0_i32 : i32, i32
  }
}

</mosaic_0001>

<bundles_post_ra>
// kernel: tpu_custom_call.1
= control target key start
LH: loop header
LB: loop body
LE: loop exit
PB: predicated region body
PF: predicated region fallthrough
CT: control target
= control target key end

     0   :  { %vm13_vm0 = vcmask 130048   ;;  %v51_v1 = vmov 0   ;;  %v25_v9 = vlaneseq  ;;  %v52_v12 = vmov 0.006666667   ;;  %s80_s0 = inlined_call_operand.vmem [shape: f32[8,16], index: 0, kind: input, shape index: {}]   ;;  %s81_s1 = inlined_call_operand.vmem [shape: s32[8,1], index: 1, kind: input, shape index: {}]   ;;  %s82_s2 = inlined_call_operand.vmem [shape: f32[8,1], index: 2, kind: output, shape index: {}]  }
   0x1   :  { %v11_v0 = vld [vmem:[%s80_s0] sm:$0xff]  ;;  %46 = vset.pattern.permute.xlu0 %v51_v1  ;;  %vm38_vm2 = vcmask 7168  }
   0x2   :  { %v14_v2 = vsel %vm13_vm0, %v11_v0, -inf  ;;  %v12_v3 = vld [vmem:[%s81_s1] sm:$0xff]  ;;  %v26_v10 = vand.u32 127, %v25_v9 }
   0x3   :  { %15 = vmax.xlane.f32.xlu0 %v14_v2 }
  0x17   :  { %28 = vperm.xlu0 %46, %v12_v3  }
  0x76   :  { %v16_v4 = vpop.xlane.xlu0 %15 }
  0x77   :  { %v17_v5 = vsub.f32 %v11_v0, %v16_v4 }
  0x79   :  { %v18_v6 = vmul.f32 1.442695, %v17_v5 }
  0x7b   :  { %47 = vpow2.f32 %v18_v6 }
  0x81   :  { %v48_v7 = vpop.eup %47 }
  0x82   :  { %v20_v8 = vsel %vm13_vm0, %v48_v7, 0.0 }
  0x83   :  { %21 = vadd.xlane.f32.xlu1 %v20_v8 }
  0x89   :  { %v29_v11 = vpop.permute.xlu0 %28 }
  0x8a   :  { %vm30_vm1 = vcmp.eq.s32.totalorder %v26_v10, %v29_v11 }
  0x8b   :  { %v31_v13 = vsel %vm30_vm1, 0.9, %v52_v12 }
  0x8c   :  { %v32_v14 = vmul.f32 %v31_v13, %v11_v0 }
  0x8e   :  { %v33_v15 = vsel %vm13_vm0, %v32_v14, 0.0 }
  0x8f   :  { %34 = vadd.xlane.f32.xlu1 %v33_v15 }
  0xf6   :  { %v22_v16 = vpop.xlane.xlu1 %21 }
  0xf7   :  { %49 = vlog2.f32 %v22_v16 }
  0xfd   :  { %v50_v17 = vpop.eup %49 }
  0xfe   :  { %v24_v18 = vmul.f32 0.6931472, %v50_v17 }
 0x100   :  { %v36_v19 = vadd.f32 %v24_v18, %v16_v4 }
 0x102   :  { %v35_v20 = vpop.xlane.xlu1 %34 }
 0x103   :  { %v37_v21 = vsub.f32 %v36_v19, %v35_v20 }
 0x105   :  { %39 = vst.msk [vmem:[%s82_s2] sm:$0xff] %vm38_vm2, %v37_v21 }

</bundles_post_ra>
